<compile_context>
chip_gen: v6e
topology: v6e:2x2x1
jax: 0.10.0
libtpu: 0.0.40
codegen_flags: <defaults>
</compile_context>

<pallas_src>
import math

import jax
import jax.numpy as jnp
from jax.experimental import pallas as pl
from jax.experimental.pallas import tpu as pltpu


_LANE = 128
_BLOCK_BYTES = 4 * 1024 * 1024     # per-stream x/out block budget (review: ~4 MiB)
_VMEM_LIMIT = 32 * 1024 * 1024     # covers 2x(x+out+pe) buffers on v5e/v6e/v7x


def _pe_add_kernel(x_ref, pe_ref, o_ref):
    """Single VPU elementwise add; pe broadcasts over the leading (batch) rows."""
    o_ref[...] = x_ref[...] + pe_ref[...]


def _make_pe_table(d_model, max_len, dtype):
    """(max_len, d_model) sinusoidal table — the PyTorch `pe` buffer."""
    assert d_model % 2 == 0, "d_model must be even (same as the PyTorch module)"
    position = jnp.arange(max_len, dtype=jnp.float32)[:, None]               # (L, 1)
    deno = jnp.exp(jnp.arange(0, d_model, 2, dtype=jnp.float32)
                   * (-math.log(10000.0) / d_model))                         # (D/2,)
    pe = jnp.zeros((max_len, d_model), dtype=jnp.float32)
    pe = pe.at[:, 0::2].set(jnp.sin(position * deno))
    pe = pe.at[:, 1::2].set(jnp.cos(position * deno))
    return pe.astype(dtype)


def _sublane_multiple(itemsize):
    return {4: 8, 2: 16, 1: 32}.get(itemsize, 8)


def _round_up(v, m):
    return ((v + m - 1) // m) * m


def _round_down_min(v, m):
    return max(m, (v // m) * m)


def _choose_flat_tile(N, B, itemsize):
    """Flat-axis tile: multiple of 128 lanes, x-block (B, TN) <= _BLOCK_BYTES."""
    budget = _round_down_min(_BLOCK_BYTES // max(1, B * itemsize), _LANE)
    if N <= budget:
        return min(budget, _round_up(N, _LANE))
    return budget


def _choose_seq_tile(S, D, itemsize):
    """Seq tile: sublane-multiple rows, (TS, D) block <= _BLOCK_BYTES."""
    sub = _sublane_multiple(itemsize)
    budget = _round_down_min(_BLOCK_BYTES // max(1, D * itemsize), sub)
    if S <= budget:
        return min(budget, _round_up(S, sub))
    return budget


@jax.jit
def _forward_flat(x, pe_flat):
    """Lane-dense path (d_model not a multiple of 128). pe_flat: (1, max_len*D)."""
    B, S, D = x.shape
    N = S * D
    itemsize = jnp.dtype(x.dtype).itemsize
    TN = _choose_flat_tile(N, B, itemsize)
    grid = (pl.cdiv(N, TN),)
    x2 = x.reshape(B, N)                               # trailing-dim flatten (layout plumbing)
    cost = pl.CostEstimate(flops=B * N, transcendentals=0,
                           bytes_accessed=(2 * B * N + N) * itemsize)
    out = pl.pallas_call(
        _pe_add_kernel,
        out_shape=jax.ShapeDtypeStruct((B, N), x.dtype),
        grid=grid,
        in_specs=[
            pl.BlockSpec((B, TN), lambda n: (0, n)),   # x: full batch folded into block
            pl.BlockSpec((1, TN), lambda n: (0, n)),   # pe: broadcast over batch rows
        ],
        out_specs=pl.BlockSpec((B, TN), lambda n: (0, n)),
        input_output_aliases={0: 0},                   # in/out index maps identical -> safe
        compiler_params=pltpu.CompilerParams(
            dimension_semantics=("parallel",),
            vmem_limit_bytes=_VMEM_LIMIT),
        cost_estimate=cost,
    )(x2, pe_flat)
    return out.reshape(B, S, D)


@jax.jit
def _forward_tiled(x, pe):
    """Structured path (d_model multiple of 128). pe: (max_len, D) full table."""
    B, S, D = x.shape
    itemsize = jnp.dtype(x.dtype).itemsize
    TS = _choose_seq_tile(S, D, itemsize)
    grid = (pl.cdiv(S, TS), B)                         # seq outer -> pe block reused over b
    cost = pl.CostEstimate(flops=B * S * D, transcendentals=0,
                           bytes_accessed=(2 * B * S * D + S * D) * itemsize)
    return pl.pallas_call(
        _pe_add_kernel,
        out_shape=jax.ShapeDtypeStruct((B, S, D), x.dtype),
        grid=grid,
        in_specs=[
            pl.BlockSpec((None, TS, D), lambda s, b: (b, s, 0)),   # x (batch squeezed)
            pl.BlockSpec((TS, D),       lambda s, b: (s, 0)),      # index full max_len table
        ],
        out_specs=pl.BlockSpec((None, TS, D), lambda s, b: (b, s, 0)),
        input_output_aliases={0: 0},
        compiler_params=pltpu.CompilerParams(
            dimension_semantics=("parallel", "parallel"),
            vmem_limit_bytes=_VMEM_LIMIT),
        cost_estimate=cost,
    )(x, pe)


class PositionalEncoding:
    """JAX/Pallas port of the PyTorch PositionalEncoding module (eval mode)."""

    def __init__(self, d_model, dropout=0.0, max_len=5000, dtype=jnp.float32):
        del dropout  # identity in eval mode
        pe = _make_pe_table(d_model, max_len, dtype)   # built once, in target dtype
        self.d_model = d_model
        self.max_len = max_len
        self._flat = (d_model % _LANE != 0)
        # Lane-dense pre-flattened table when d_model isn't a multiple of 128.
        self.pe = pe.reshape(1, max_len * d_model) if self._flat else pe

    def __call__(self, x):
        B, S, D = x.shape
        assert D == self.d_model and S <= self.max_len
        return _forward_flat(x, self.pe) if self._flat else _forward_tiled(x, self.pe)


def positional_encoding_ref(x):
    """Pure-JAX reference reproducing the PyTorch buffer construction."""
    B, S, D = x.shape
    position = jnp.arange(S, dtype=jnp.float32)[:, None]
    deno = jnp.exp(jnp.arange(0, D, 2, dtype=jnp.float32)
                   * (-math.log(10000.0) / D))
    pe = jnp.zeros((S, D), dtype=jnp.float32)
    pe = pe.at[:, 0::2].set(jnp.sin(position * deno))
    pe = pe.at[:, 1::2].set(jnp.cos(position * deno))
    return x + pe[None, :, :].astype(x.dtype)


if __name__ == "__main__":
    B, S, D = 2, 8, 32          # batch=2, seq=8, d_model=32 (toy shape)
    key = jax.random.PRNGKey(0)
    x = jax.random.normal(key, (B, S, D), dtype=jnp.float32)

    module = PositionalEncoding(d_model=D, dropout=0.1, max_len=64)

    ref = positional_encoding_ref(x)     # compute reference before the (aliasing) call

    out = module(x)
    out = jax.block_until_ready(out)

    assert out.shape == (B, S, D)
    assert jnp.allclose(out, ref, atol=1e-5, rtol=1e-5)

    print("KERNEL_OK")
</pallas_src>

<mosaic_0001>
module attributes {stable_mosaic.version = 11 : i64} {
  func.func @_pe_add_kernel(%arg0: i32, %arg1: memref<2x256xf32, #tpu.memory_space<vmem>>, %arg2: memref<1x256xf32, #tpu.memory_space<vmem>>, %arg3: memref<2x256xf32, #tpu.memory_space<vmem>>) attributes {dimension_semantics = [#tpu.dimension_semantics<parallel>], iteration_bounds = array<i64: 1>, scalar_prefetch = 0 : i64, scratch_operands = 0 : i64, tpu.core_type = #tpu.core_type<tc>, window_params = [{transform_indices = @transform_0, window_bounds = array<i64: 2, 256>}, {transform_indices = @transform_1, window_bounds = array<i64: 1, 256>}, {transform_indices = @transform_2, window_bounds = array<i64: 2, 256>}]} {
    %c0 = arith.constant 0 : index
    %c0_0 = arith.constant 0 : index
    %0 = vector.load %arg1[%c0, %c0_0] : memref<2x256xf32, #tpu.memory_space<vmem>>, vector<2x256xf32>
    %c0_1 = arith.constant 0 : index
    %c0_2 = arith.constant 0 : index
    %1 = vector.load %arg2[%c0_1, %c0_2] : memref<1x256xf32, #tpu.memory_space<vmem>>, vector<1x256xf32>
    %2 = vector.broadcast %1 : vector<1x256xf32> to vector<2x256xf32>
    %3 = arith.addf %0, %2 : vector<2x256xf32>
    %c0_3 = arith.constant 0 : index
    %c0_4 = arith.constant 0 : index
    %4 = vector.load %arg3[%c0_3, %c0_4] : memref<2x256xf32, #tpu.memory_space<vmem>>, vector<2x256xf32>
    tpu.vector_store %arg3[%c0_3, %c0_4], %3 {strides = array<i32>} : memref<2x256xf32, #tpu.memory_space<vmem>>, vector<2x256xf32>,
    return
  }
  func.func @transform_0(%arg0: i32) -> (i32, i32) {
    %c0_i32 = arith.constant 0 : i32
    %c0_i32_0 = arith.constant 0 : i32
    return %c0_i32, %arg0 : i32, i32
  }
  func.func @transform_1(%arg0: i32) -> (i32, i32) {
    %c0_i32 = arith.constant 0 : i32
    %c0_i32_0 = arith.constant 0 : i32
    return %c0_i32, %arg0 : i32, i32
  }
  func.func @transform_2(%arg0: i32) -> (i32, i32) {
    %c0_i32 = arith.constant 0 : i32
    %c0_i32_0 = arith.constant 0 : i32
    return %c0_i32, %arg0 : i32, i32
  }
}

</mosaic_0001>

<bundles_post_ra>
// kernel: _forward_flat.1
= control target key start
LH: loop header
LB: loop body
LE: loop exit
PB: predicated region body
PF: predicated region fallthrough
CT: control target
= control target key end

     0   :  { %v14_v0 = vlaneseq  ;;  %v38_v1 = vmov 1983009808   ;;  %s63_s1 = inlined_call_operand.vmem [shape: f32[1,2048], index: 1, kind: input, shape index: {}]   ;;  %s64_s0 = inlined_call_operand.vmem [shape: f32[2,256], index: 0, kind: input, shape index: {}, may-alias: {0,2}]   ;;  %s65_s2 = inlined_call_operand.vmem [shape: f32[2,256], index: 2, kind: output, shape index: {}, may-alias: {0,2}]  }
   0x1   :  { %v24_v2 = vunpack.c.l.s4 %v38_v1  ;;  %v12_v4 = vld [vmem:[%s63_s1] sm:$0x3] }
   0x2   :  { %v15_v3 = vshrl.u32 %v14_v0, 7  ;;  %v11_v12 = vld [vmem:[%s64_s0] sm:$0xf] }
   0x3   :  { %v25_v5 = vunpack.c.0.s8 %v24_v2 }
   0x4   :  { %v16_v6 = vsub.s32 0, %v15_v3  ;;  %v20_v7 = vsub.s32 1, %v15_v3 }
   0x5   :  { %v28_v10 = vsub.s32 %v25_v5, %v15_v3 }
   0x6   :  { %v17_v8 = vrot.slane %v12_v4, %v16_v6  ;;  %v21_v9 = vrot.slane %v12_v4, %v20_v7 }
   0x8   :  { %v22_v11 = vcombine.low %v17_v8, %v21_v9 }
   0xa   :  { %v29_v13 = vrot.slane %v22_v11, %v28_v10 }
   0xc   :  { %v31_v14 = vadd.f32 %v29_v13, %v11_v12 }
   0xe   :  { %32 = vst [vmem:[%s65_s2] sm:$0xf] %v31_v14 }

</bundles_post_ra>
